<compile_context>
chip_gen: v7x
topology: tpu7x:2x2x1
jax: 0.10.0
libtpu: 0.0.40
codegen_flags: <defaults>
</compile_context>

<pallas_src>
import functools

import jax
import jax.numpy as jnp
from jax.experimental import pallas as pl
from jax.experimental.pallas import tpu as pltpu


def _focal_loss_kernel(logits_ref, targets_ref, out_ref, *, alpha, gamma):
    """One lane-tile: logits_ref (C, T) class-major, targets_ref (1, T) int32."""
    x = logits_ref[...].astype(jnp.float32)              # (C, T)
    t = targets_ref[...]                                  # (1, T) int32

    # log_softmax over the class axis (sublanes): all reductions are per-lane.
    m = jnp.max(x, axis=0, keepdims=True)                 # (1, T)
    z = x - m                                             # (C, T)
    sum_exp = jnp.sum(jnp.exp(z), axis=0, keepdims=True)  # (1, T)
    lse = jnp.log(sum_exp)                                 # (1, T)

    # Gather the true-class value of z via select-then-sum (no onehot multiply,
    # no full log_probs intermediate, no -inf * 0 NaN hazard).
    cls = jax.lax.broadcasted_iota(jnp.int32, x.shape, 0)  # (C, T)
    z_true = jnp.sum(jnp.where(cls == t, z, 0.0), axis=0, keepdims=True)

    log_p = z_true - lse                                   # (1, T) log p_true
    p = jnp.exp(log_p)                                     # (1, T) p_true
    one_minus_p = jnp.clip(1.0 - p, 0.0, 1.0)              # guard pow edge cases

    g = float(gamma)
    if g == 0.0:
        w = jnp.ones_like(one_minus_p)                     # pow(x, 0) == 1
    elif g.is_integer() and 1 <= int(g) <= 8:
        w = one_minus_p                                    # cheap integer powers
        for _ in range(int(g) - 1):
            w = w * one_minus_p
    else:
        w = jnp.power(one_minus_p, jnp.float32(g))

    # Lane-dense per-sample loss row; ragged tail lanes are dropped on writeback.
    out_ref[...] = (-jnp.float32(alpha)) * w * log_p


def _round_up(x, m):
    return ((x + m - 1) // m) * m


def _choose_lane_tile(n, c):
    """Lane-tile over the batch axis for the class-major kernel.

    Sized by *padded* VMEM bytes: a (C, TN) f32 block costs
    round_up(C, 8) * TN * 4 bytes; target ~1 MiB so double-buffered inputs
    plus a handful of f32 temporaries stay well under every generation's
    scoped-VMEM budget (v5e 16 MiB default, v6e/v7x 32 MiB).
    """
    if n <= 128:
        return n                       # single block; full-extent dims are always legal
    c_sub = _round_up(c, 8)
    target_bytes = 1 << 20             # ~1 MiB of f32 per logits block
    tn = max(128, (target_bytes // (c_sub * 4)) // 128 * 128)
    # v7x megacore: grid axis is "parallel"; ensure >= 2 grid steps so both
    # TensorCores get work (essentially free to add).
    half = max(128, _round_up((n + 1) // 2, 128))
    return min(tn, half)


def focal_loss(logits, targets, *, alpha=1.0, gamma=2.0, reduction="mean"):
    """Pallas FocalLoss. logits: (N, C) float32/bfloat16, targets: (N,) int."""
    if reduction not in ("mean", "sum", "none"):
        raise ValueError(f"bad reduction: {reduction}")
    if gamma < 0:
        raise ValueError("gamma must be non-negative")
    if not isinstance(alpha, (int, float)):
        # TODO(synk): per-class alpha (list / array gathered by target) not
        # implemented; scalar alpha only, matching FocalLoss(alpha=1.0).
        raise NotImplementedError("only scalar alpha is supported")

    N, C = logits.shape
    itemsize = jnp.dtype(logits.dtype).itemsize

    # Class-major relayout: classes -> sublanes, samples -> lanes.
    # TODO(synk): for vocab-scale C (class axis too big to keep resident in a
    # (C, TN) block) switch to a row-major kernel with an inner "arbitrary"
    # grid axis over C + online softmax instead of this wrapper transpose.
    logits_t = logits.T                                    # (C, N)
    targets_row = targets.reshape(1, N).astype(jnp.int32)  # (1, N) lane-dense

    tn = _choose_lane_tile(N, C)
    num_tiles = pl.cdiv(N, tn)

    c_sub = _round_up(C, 8)
    blk_f32_bytes = c_sub * tn * 4
    # Explicit scoped-VMEM budget: double-buffered input + a few f32 temps.
    vmem_limit = int(min(max(32 << 20, 8 * blk_f32_bytes), 64 << 20))

    kernel = functools.partial(
        _focal_loss_kernel, alpha=float(alpha), gamma=float(gamma))

    cost = pl.CostEstimate(
        flops=int(8 * N * C),
        transcendentals=int(N * C + 4 * N),
        bytes_accessed=int(N * C * itemsize + 4 * N + 4 * N),
    )

    out = pl.pallas_call(
        kernel,
        out_shape=jax.ShapeDtypeStruct((1, N), jnp.float32),
        grid=(num_tiles,),
        in_specs=[
            pl.BlockSpec((C, tn), lambda i: (0, i)),   # whole class axis resident
            pl.BlockSpec((1, tn), lambda i: (0, i)),   # lane-dense targets row
        ],
        out_specs=pl.BlockSpec((1, tn), lambda i: (0, i)),  # lane-dense loss row
        compiler_params=pltpu.CompilerParams(
            dimension_semantics=("parallel",),
            vmem_limit_bytes=vmem_limit,
        ),
        cost_estimate=cost,
    )(logits_t, targets_row)

    per_sample = out[0]                         # (N,) — exactly the valid samples
    if reduction == "none":
        return per_sample
    total = jnp.sum(per_sample)                 # tiny wrapper-side reduce over N floats
    if reduction == "mean":
        return total / jnp.float32(N)
    return total


def _focal_loss_ref(logits, targets, *, alpha=1.0, gamma=2.0, reduction="mean"):
    """Pure-JAX reference mirroring the PyTorch forward."""
    log_probs = jax.nn.log_softmax(logits.astype(jnp.float32), axis=1)
    lp_t = jnp.take_along_axis(log_probs, targets[:, None], axis=1)[:, 0]
    p_t = jnp.exp(lp_t)
    loss = -alpha * jnp.power(1.0 - p_t, gamma) * lp_t
    if reduction == "mean":
        return jnp.mean(loss)
    if reduction == "sum":
        return jnp.sum(loss)
    return loss


if __name__ == "__main__":
    key = jax.random.PRNGKey(0)
    k1, k2, k3, k4, k5, k6 = jax.random.split(key, 6)

    # Case 1: tiny ragged batch (N not a multiple of 8/128), single tile.
    N, C = 10, 16
    logits = jax.random.normal(k1, (N, C), dtype=jnp.float32)
    targets = jax.random.randint(k2, (N,), 0, C, dtype=jnp.int32)
    for reduction in ("mean", "sum", "none"):
        out = jax.block_until_ready(
            focal_loss(logits, targets, alpha=0.25, gamma=2.0,
                       reduction=reduction))
        ref = _focal_loss_ref(logits, targets, alpha=0.25, gamma=2.0,
                              reduction=reduction)
        assert jnp.allclose(out, ref, rtol=1e-5, atol=1e-5), (reduction, out, ref)

    # Case 2: multi-tile grid with a ragged last lane-block, bf16 ingest,
    # non-integer gamma.
    N2, C2 = 2500, 16
    logits2 = jax.random.normal(k3, (N2, C2), dtype=jnp.float32).astype(
        jnp.bfloat16)
    targets2 = jax.random.randint(k4, (N2,), 0, C2, dtype=jnp.int32)
    out_m = jax.block_until_ready(
        focal_loss(logits2, targets2, alpha=1.0, gamma=1.5, reduction="mean"))
    ref_m = _focal_loss_ref(logits2, targets2, alpha=1.0, gamma=1.5,
                            reduction="mean")
    assert jnp.allclose(out_m, ref_m, rtol=1e-4, atol=1e-4), (out_m, ref_m)
    out_n = jax.block_until_ready(
        focal_loss(logits2, targets2, alpha=1.0, gamma=1.5, reduction="none"))
    ref_n = _focal_loss_ref(logits2, targets2, alpha=1.0, gamma=1.5,
                            reduction="none")
    assert jnp.allclose(out_n, ref_n, rtol=1e-4, atol=1e-4)

    # Case 3: class count not a multiple of 8 (sublane-ragged class axis).
    N3, C3 = 37, 5
    logits3 = jax.random.normal(k5, (N3, C3), dtype=jnp.float32)
    targets3 = jax.random.randint(k6, (N3,), 0, C3, dtype=jnp.int32)
    out3 = jax.block_until_ready(focal_loss(logits3, targets3, reduction="sum"))
    ref3 = _focal_loss_ref(logits3, targets3, reduction="sum")
    assert jnp.allclose(out3, ref3, rtol=1e-5, atol=1e-5), (out3, ref3)

    print("KERNEL_OK")
</pallas_src>

<mosaic_0001>
module attributes {stable_mosaic.version = 11 : i64} {
  func.func @_focal_loss_kernel(%arg0: i32, %arg1: memref<16x10xf32, #tpu.memory_space<vmem>>, %arg2: memref<1x10xi32, #tpu.memory_space<vmem>>, %arg3: memref<1x10xf32, #tpu.memory_space<vmem>>) attributes {dimension_semantics = [#tpu.dimension_semantics<parallel>], iteration_bounds = array<i64: 1>, scalar_prefetch = 0 : i64, scratch_operands = 0 : i64, tpu.core_type = #tpu.core_type<tc>, window_params = [{transform_indices = @transform_0, window_bounds = array<i64: 16, 10>}, {transform_indices = @transform_1, window_bounds = array<i64: 1, 10>}, {transform_indices = @transform_2, window_bounds = array<i64: 1, 10>}]} {
    %c0 = arith.constant 0 : index
    %c0_0 = arith.constant 0 : index
    %0 = vector.load %arg1[%c0, %c0_0] : memref<16x10xf32, #tpu.memory_space<vmem>>, vector<16x10xf32>
    %c0_1 = arith.constant 0 : index
    %c0_2 = arith.constant 0 : index
    %1 = vector.load %arg2[%c0_1, %c0_2] : memref<1x10xi32, #tpu.memory_space<vmem>>, vector<1x10xi32>
    %cst = arith.constant dense<0xFF800000> : vector<10xf32>
    %2 = vector.multi_reduction <maximumf>, %0, %cst [0] : vector<16x10xf32> to vector<10xf32>
    %3 = vector.shape_cast %2 : vector<10xf32> to vector<1x10xf32>
    %4 = vector.broadcast %3 : vector<1x10xf32> to vector<16x10xf32>
    %5 = arith.subf %0, %4 : vector<16x10xf32>
    %6 = math.exp %5 : vector<16x10xf32>
    %cst_3 = arith.constant dense<0.000000e+00> : vector<10xf32>
    %7 = vector.multi_reduction <add>, %6, %cst_3 [0] : vector<16x10xf32> to vector<10xf32>
    %8 = vector.shape_cast %7 : vector<10xf32> to vector<1x10xf32>
    %9 = math.log %8 : vector<1x10xf32>
    %10 = tpu.iota {dimensions = array<i32: 0>} : vector<16x10xi32>
    %11 = vector.broadcast %1 : vector<1x10xi32> to vector<16x10xi32>
    %12 = arith.cmpi eq, %10, %11 : vector<16x10xi32>
    %cst_4 = arith.constant 0.000000e+00 : f32
    %13 = vector.broadcast %cst_4 : f32 to vector<16x10xf32>
    %14 = arith.select %12, %5, %13 : vector<16x10xi1>, vector<16x10xf32>
    %cst_5 = arith.constant dense<0.000000e+00> : vector<10xf32>
    %15 = vector.multi_reduction <add>, %14, %cst_5 [0] : vector<16x10xf32> to vector<10xf32>
    %16 = vector.shape_cast %15 : vector<10xf32> to vector<1x10xf32>
    %17 = arith.subf %16, %9 : vector<1x10xf32>
    %18 = math.exp %17 : vector<1x10xf32>
    %cst_6 = arith.constant 1.000000e+00 : f32
    %19 = vector.broadcast %cst_6 : f32 to vector<1x10xf32>
    %20 = arith.subf %19, %18 : vector<1x10xf32>
    %cst_7 = arith.constant 0.000000e+00 : f32
    %cst_8 = arith.constant 1.000000e+00 : f32
    %21 = vector.broadcast %cst_7 : f32 to vector<1x10xf32>
    %22 = arith.maximumf %21, %20 : vector<1x10xf32>
    %23 = vector.broadcast %cst_8 : f32 to vector<1x10xf32>
    %24 = arith.minimumf %23, %22 : vector<1x10xf32>
    %25 = arith.mulf %24, %24 : vector<1x10xf32>
    %cst_9 = arith.constant 0.000000e+00 : f32
    %cst_10 = arith.constant 2.500000e-01 : f32
    %26 = arith.subf %cst_9, %cst_10 : f32
    %27 = vector.broadcast %26 : f32 to vector<1x10xf32>
    %28 = arith.mulf %27, %25 : vector<1x10xf32>
    %29 = arith.mulf %28, %17 : vector<1x10xf32>
    %c0_11 = arith.constant 0 : index
    %c0_12 = arith.constant 0 : index
    %30 = vector.load %arg3[%c0_11, %c0_12] : memref<1x10xf32, #tpu.memory_space<vmem>>, vector<1x10xf32>
    tpu.vector_store %arg3[%c0_11, %c0_12], %29 {strides = array<i32>} : memref<1x10xf32, #tpu.memory_space<vmem>>, vector<1x10xf32>,
    return
  }
  func.func @transform_0(%arg0: i32) -> (i32, i32) {
    %c0_i32 = arith.constant 0 : i32
    %c0_i32_0 = arith.constant 0 : i32
    return %c0_i32, %arg0 : i32, i32
  }
  func.func @transform_1(%arg0: i32) -> (i32, i32) {
    %c0_i32 = arith.constant 0 : i32
    %c0_i32_0 = arith.constant 0 : i32
    return %c0_i32, %arg0 : i32, i32
  }
  func.func @transform_2(%arg0: i32) -> (i32, i32) {
    %c0_i32 = arith.constant 0 : i32
    %c0_i32_0 = arith.constant 0 : i32
    return %c0_i32, %arg0 : i32, i32
  }
}

</mosaic_0001>

<bundles_post_ra>
// kernel: tpu_custom_call.1
= control target key start
LH: loop header
LB: loop body
LE: loop exit
PB: predicated region body
PF: predicated region fallthrough
CT: control target
= control target key end

     0   :  { %7 = vsyncpa [#allocation3], 0  ;;  %s215_s0 = inlined_call_operand.hbm [shape: f32[16,10], index: 0, kind: input, shape index: {}]   ;;  %s216_s1 = inlined_call_operand.vmem [shape: s32[1,10], index: 1, kind: input, shape index: {}]   ;;  %s217_s2 = inlined_call_operand.hbm [shape: f32[1,10], index: 2, kind: output, shape index: {}]  }
   0x1   :  { %8 = vsyncpa [#allocation4], 0  ;;  %s163_s9 = smov [#allocation2]   ;;  %s115_s13 = scalar_lea.hbm %s215_s0, 256 }
   0x2   :  { %s14_s10 = sshll.u32 %s163_s9, 4  ;;  %p116_p0 = scmp.ne.s32.totalorder %s215_s0, %s115_s13  ;;  %s15_s10 = int_to_ptr.vmem [resolvable:$true] %s14_s10 }
   0x3   :  { %p119_p1 = scmp.lt.u32.totalorder %s115_s13, %s215_s0 }
   0x5   :  { %p121_p2 = pnand %p119_p1, %p116_p0 }
   0x7   :  { %124 = shalt.err (!%p121_p2)
}
   0x8   :  { %s125_s18 = scalar_lea.vmem %s15_s10, 256  ;;  %p130_p4 = scmp.lt.s32.totalorder %s15_s10, %s15_s10 }
   0x9   :  { %p126_p3 = scmp.ne.s32.totalorder %s15_s10, %s125_s18  ;;  %p131_p5 = scmp.lt.s32.totalorder %s125_s18, %s125_s18 }
   0xb   :  { %p132_p6 = por %p131_p5, %p130_p4 }
   0xd   :  { %p133_p7 = pnand %p132_p6, %p126_p3 }
   0xf   :  { %136 = shalt.err (!%p133_p7)
}
  0x10   :  { %s164_s19 = smov 128   ;;  %s165_s20 = smov 8  }
  0x11   :  { %20 = dma.hbm_to_vmem [thread:$0]  %s215_s0, 256, %s15_s10, [#allocation3], %s164_s19, %s164_s19, %s165_s20  }
  0x12   :  { %159 = dma.done.wait [#allocation3], 256  }
  0x13   :  { %160 = vsyncadd [#allocation3], 4294967040  ;;  %vm29_vm0 = vcmask 80896   ;;  %v26_v0 = vld [vmem:[#allocation2] sm:$0xff]  ;;  %v27_v1 = vld [vmem:[#allocation2 + $0x8] sm:$0xff]  ;;  %v56_v9 = vlaneseq  ;;  %vm85_vm3 = vcmask 73728  }
  0x14   :  { %v30_v2 = vsel %vm29_vm0, %v26_v0, -inf  ;;  %v31_v3 = vsel %vm29_vm0, %v27_v1, -inf  ;;  %v102_v18 = vld [vmem:[%s216_s1] ss:$0 sm:$0xff]  ;;  %s166_s1 = smov [#allocation5]  }
  0x15   :  { %v32_v4 = vmax.f32 %v30_v2, %v31_v3  ;;  %v57_v12 = vshrl.u32 %v56_v9, 7  ;;  %s93_s24 = sshll.u32 %s166_s1, 4  ;;  %s94_s24 = int_to_ptr.vmem [resolvable:$true] %s93_s24 }
  0x16   :  { %s137_s25 = scalar_lea.vmem %s94_s24, 16  ;;  %s141_s26 = scalar_lea.vmem %s94_s24, 32 }
  0x17   :  { %v33_v5 = vrot.slane %v32_v4, 4  ;;  %v58_v17 = vadd.s32 8, %v57_v12  ;;  %vm63_vm1 = vcmp.eq.s32.totalorder %v57_v12, %v102_v18  ;;  %p138_p8 = scmp.ne.s32.totalorder %s94_s24, %s137_s25  ;;  %p142_p9 = scmp.lt.s32.totalorder %s94_s24, %s94_s24 }
  0x18   :  { %p143_p10 = scmp.lt.s32.totalorder %s141_s26, %s137_s25 }
  0x19   :  { %v34_v6 = vmax.f32 %v32_v4, %v33_v5  ;;  %vm64_vm2 = vcmp.eq.s32.totalorder %v58_v17, %v102_v18 }
  0x1a   :  { %p144_p11 = por %p143_p10, %p142_p9 }
  0x1b   :  { %v35_v7 = vrot.slane %v34_v6, 2 }
  0x1c   :  { %p145_p12 = pnand %p144_p11, %p138_p8 }
  0x1d   :  { %v36_v8 = vmax.f32 %v34_v6, %v35_v7 }
  0x1f   :  { %v37_v10 = vrot.slane %v36_v8, 1 }
  0x21   :  { %v38_v11 = vmax.f32 %v36_v8, %v37_v10 }
  0x23   :  { %v39_v13 = vsub.f32 %v26_v0, %v38_v11  ;;  %v40_v14 = vsub.f32 %v27_v1, %v38_v11 }
  0x25   :  { %v41_v15 = vmul.f32 1.442695, %v39_v13  ;;  %v43_v16 = vmul.f32 1.442695, %v40_v14  ;;  %v65_v19 = vsel %vm63_vm1, %v39_v13, 0.0  ;;  %v66_v20 = vsel %vm64_vm2, %v40_v14, 0.0 }
  0x26   :  { %v67_v21 = vsel %vm29_vm0, %v65_v19, 0.0  ;;  %v68_v22 = vsel %vm29_vm0, %v66_v20, 0.0 }
  0x27   :  { %107 = vpow2.f32 %v41_v15  ;;  %v69_v27 = vadd.f32 %v68_v22, %v67_v21 }
  0x28   :  { %109 = vpow2.f32 %v43_v16 }
  0x29   :  { %v70_v30 = vrot.slane %v69_v27, 4 }
  0x2b   :  { %v71_v33 = vadd.f32 %v70_v30, %v69_v27 }
  0x2d   :  { %v72_v36 = vrot.slane %v71_v33, 2 }
  0x2f   :  { %v73_v38 = vadd.f32 %v72_v36, %v71_v33 }
  0x31   :  { %v108_v23 = vpop.eup %107  ;;  %v74_v39 = vrot.slane %v73_v38, 1 }
  0x32   :  { %v110_v24 = vpop.eup %109  ;;  %v45_v25 = vsel %vm29_vm0, %v108_v23, 0.0 }
  0x33   :  { %v46_v26 = vsel %vm29_vm0, %v110_v24, 0.0  ;;  %v75_v40 = vadd.f32 %v74_v39, %v73_v38 }
  0x34   :  { %v47_v28 = vadd.f32 %v46_v26, %v45_v25 }
  0x36   :  { %v48_v29 = vrot.slane %v47_v28, 4 }
  0x38   :  { %v49_v31 = vadd.f32 %v48_v29, %v47_v28 }
  0x3a   :  { %v50_v32 = vrot.slane %v49_v31, 2 }
  0x3c   :  { %v51_v34 = vadd.f32 %v50_v32, %v49_v31 }
  0x3e   :  { %v52_v35 = vrot.slane %v51_v34, 1 }
  0x40   :  { %v53_v37 = vadd.f32 %v52_v35, %v51_v34 }
  0x42   :  { %111 = vlog2.f32 %v53_v37 }
  0x4c   :  { %v112_v41 = vpop.eup %111 }
  0x4d   :  { %v55_v42 = vmul.f32 0.6931472, %v112_v41 }
  0x4f   :  { %v76_v43 = vsub.f32 %v75_v40, %v55_v42 }
  0x51   :  { %v77_v44 = vmul.f32 1.442695, %v76_v43 }
  0x53   :  { %113 = vpow2.f32 %v77_v44 }
  0x5d   :  { %v114_v45 = vpop.eup %113 }
  0x5e   :  { %v79_v46 = vsub.f32 1.0, %v114_v45 }
  0x60   :  { %v80_v47 = vmax.f32 %v79_v46, 0.0 }
  0x62   :  { %v81_v48 = vmin.f32 %v80_v47, 1.0 }
  0x64   :  { %v82_v49 = vmul.f32 %v81_v48, %v81_v48 }
  0x66   :  { %v83_v50 = vmul.f32 -0.25, %v82_v49 }
  0x68   :  { %v84_v51 = vmul.f32 %v83_v50, %v76_v43 }
  0x6a   :  { %86 = vst.msk [vmem:[#allocation5] sm:$0x1] %vm85_vm3, %v84_v51 }
  0x6b   :  { %148 = shalt.err (!%p145_p12)
}
  0x6c   :  { %s149_s29 = scalar_lea.hbm %s217_s2, 16 }
  0x6d   :  { %p150_p13 = scmp.ne.s32.totalorder %s217_s2, %s149_s29  ;;  %p153_p0 = scmp.lt.u32.totalorder %s149_s29, %s217_s2 }
  0x6f   :  { %p155_p1 = pnand %p153_p0, %p150_p13 }
  0x71   :  { %158 = shalt.err (!%p155_p1)
}
  0x72   :  { %96 = dma.vmem_to_hbm [thread:$0]  %s94_s24, 16, %s217_s2, [#allocation4]  }
  0x73   :  { %161 = dma.done.wait [#allocation4], 16  }
  0x74   :  { %162 = vsyncadd [#allocation4], 4294967280 }
  0x75   :  { %100 = vsyncpa [#allocation3], 1 }
  0x76   :  { %101 = vsyncpa [#allocation4], 1 }

</bundles_post_ra>
